<compile_context>
chip_gen: v7x
topology: tpu7x:2x2x1
jax: 0.10.0
libtpu: 0.0.40
codegen_flags: <defaults>
</compile_context>

<pallas_src>
import functools

import jax
import jax.numpy as jnp
from jax import lax
from jax.experimental import pallas as pl
from jax.experimental.pallas import tpu as pltpu

_OUT_LANES = 128                 # packed output: [log_probs (A) | value | 0 pad]
_VMEM_LIMIT_BYTES = 32 << 20     # explicit scoped-VMEM limit (all of v5e/v6e/v7x)
_VMEM_TILE_BUDGET = _VMEM_LIMIT_BYTES // 2   # headroom for Mosaic temporaries


def _conv_sizes(H, W):
    Ho1, Wo1 = H - 1, W - 1
    Hp, Wp = Ho1 // 2, Wo1 // 2
    Ho2, Wo2 = Hp - 1, Wp - 1
    Ho3, Wo3 = Ho2 - 1, Wo2 - 1
    return Ho1, Wo1, Hp, Wp, Ho2, Wo2, Ho3, Wo3


def _choose_tb(B, H, W):
    """Batch tile from a VMEM budget (not a hard cap).

    Targets as many head-matmul rows as the budget allows; when B exceeds one
    tile, uses an even number of roughly equal grid steps so v7x's two
    TensorCores each get comparable blocks (on v5e/v6e the grid is a serial
    loop and fewer/larger steps amortize the ~0.35 us per-step overhead).
    """
    Ho1, Wo1, Hp, Wp, Ho2, Wo2, Ho3, Wo3 = _conv_sizes(H, W)
    E = Ho3 * Wo3 * 64
    # per-image working set (bytes): bf16 patch input block (double-buffered),
    # f32 activations, f32 output block (double-buffered).
    per_image = (2 * 2 * Ho1 * Wo1 * 12
                 + 4 * Ho1 * Wo1 * 16
                 + 4 * Hp * Wp * 16
                 + 4 * Ho2 * Wo2 * 32
                 + 4 * Ho3 * Wo3 * 64
                 + 4 * 3 * 128
                 + 2 * 4 * _OUT_LANES)
    # grid-invariant weights, conservatively charged twice (double-buffered).
    weight_bytes = 2 * (2 * (12 * 16 + 64 * 32 + 128 * 64 + E * 128 + 128 * 128)
                        + 4 * 8 * 128)
    budget = max(_VMEM_TILE_BUDGET - weight_bytes, per_image)
    tb = int(max(1, min(budget // per_image, 1024)))
    if B <= tb:
        return B
    n_steps = -(-B // tb)
    n_steps += n_steps % 2                     # even step count for v7x's 2 TCs
    tb = -(-B // n_steps)
    return -(-tb // 16) * 16                   # sublane-tile aligned partial blocks


def _conv2x2_relu(x, wp_ref, bias_row):
    """2x2 VALID conv (stride 1, NHWC) + bias + ReLU as a sum of 4 per-tap
    MXU matmuls (no lane-concat im2col).

    x is f32; each tap is sliced/reshaped in f32 (cheap, proven lowerings) and
    cast to bf16 right before the dot.  wp_ref rows are (kh*2+kw)*Ci + ci, so
    every static weight slice is aligned to the bf16 16-row packing.
    """
    B, Hi, Wi, Ci = x.shape
    Ho, Wo = Hi - 1, Wi - 1
    Co = wp_ref.shape[-1]
    acc = None
    for t, (di, dj) in enumerate(((0, 0), (0, 1), (1, 0), (1, 1))):
        tap = x[:, di:di + Ho, dj:dj + Wo, :].reshape(B * Ho * Wo, Ci)
        d = jnp.dot(tap.astype(jnp.bfloat16), wp_ref[t * Ci:(t + 1) * Ci, :],
                    preferred_element_type=jnp.float32)
        acc = d if acc is None else acc + d
    acc = acc + bias_row                        # (1, Co) f32, implicit broadcast
    return jnp.maximum(acc, 0.0).reshape(B, Ho, Wo, Co)


def _pnn_kernel(p1_ref, w1_ref, w2_ref, w3_ref, wh1_ref, wh2_ref, b_ref,
                out_ref, *, n_actions, conv1_hw):
    f32 = jnp.float32
    bf16 = jnp.bfloat16
    Ho1, Wo1 = conv1_hw
    TB = out_ref.shape[0]

    # conv1 (3->16, 2x2) + bias + ReLU: the wrapper already im2col'd the image
    # into lane-packed bf16 patches, so this is exactly one MXU dot.
    h1 = jnp.dot(p1_ref[...], w1_ref[...], preferred_element_type=f32)
    h1 = jnp.maximum(h1 + b_ref[0:1, 0:16], 0.0)        # (TB*Ho1*Wo1, 16) f32
    h1 = h1.reshape(TB, Ho1, Wo1, 16)

    # MaxPool2d((2,2)), stride 2, floor mode — layout-preserving reshapes +
    # constant-index slices + elementwise max (no jnp.stack / concatenate).
    Hp, Wp = Ho1 // 2, Wo1 // 2
    hh = h1[:, 0:2 * Hp, :, :].reshape(TB * Hp, 2, Wo1, 16)   # split major H dim
    hm = jnp.maximum(hh[:, 0, :, :], hh[:, 1, :, :])          # (TB*Hp, Wo1, 16)
    ww = hm[:, 0:2 * Wp, :].reshape(TB * Hp, Wp, 2, 16)       # pair W (sublane)
    pooled = jnp.maximum(ww[:, :, 0, :], ww[:, :, 1, :])      # (TB*Hp, Wp, 16)
    pooled = pooled.reshape(TB, Hp, Wp, 16)

    # conv2 (16->32) + ReLU ; conv3 (32->64) + ReLU, sum-of-4-taps MXU form.
    h2 = _conv2x2_relu(pooled, w2_ref, b_ref[1:2, 0:32])      # (TB, Hp-1, Wp-1, 32)
    h3 = _conv2x2_relu(h2, w3_ref, b_ref[2:3, 0:64])          # (TB, Hp-2, Wp-2, 64)

    # Flatten (NHWC).  Equal to torch's NCHW flatten when the final spatial
    # extent is 1x1 (the standard gridworld config); see pack_params note.
    E = h3.shape[1] * h3.shape[2] * 64
    emb = h3.reshape(TB, E).astype(bf16)

    # Fused actor|critic heads on 128 lanes; bf16 MXU inputs, f32 elementwise.
    hid = jnp.tanh(jnp.dot(emb, wh1_ref[...], preferred_element_type=f32)
                   + b_ref[3:4, :])                           # (TB, 128) f32
    raw = (jnp.dot(hid.astype(bf16), wh2_ref[...], preferred_element_type=f32)
           + b_ref[4:5, :])                                   # (TB, 128) f32

    # log_softmax over the first n_actions lanes; keep the value lane raw.
    lane = lax.broadcasted_iota(jnp.int32, raw.shape, 1)
    amask = lane < n_actions
    mx = jnp.max(jnp.where(amask, raw, -jnp.inf), axis=1, keepdims=True)
    z = raw - mx
    ssum = jnp.sum(jnp.where(amask, jnp.exp(z), 0.0), axis=1, keepdims=True)
    logp = z - jnp.log(ssum)

    out_ref[...] = jnp.where(amask, logp, raw)                # one lane-dense store


def make_params(key, H, W, n_actions):
    """Deterministic synthetic init (conv/actor/critic weights; biases zero)."""
    E = ((H - 1) // 2 - 2) * ((W - 1) // 2 - 2) * 64
    ks = jax.random.split(key, 7)
    f32 = jnp.float32
    return {
        "w1": 0.1 * jax.random.normal(ks[0], (2, 2, 3, 16), f32),
        "b1": jnp.zeros((16,), f32),
        "w2": 0.1 * jax.random.normal(ks[1], (2, 2, 16, 32), f32),
        "b2": jnp.zeros((32,), f32),
        "w3": 0.1 * jax.random.normal(ks[2], (2, 2, 32, 64), f32),
        "b3": jnp.zeros((64,), f32),
        # linear weights stored (in, out)
        "wa1": 0.1 * jax.random.normal(ks[3], (E, 64), f32),
        "ba1": jnp.zeros((64,), f32),
        "wa2": 0.1 * jax.random.normal(ks[4], (64, n_actions), f32),
        "ba2": jnp.zeros((n_actions,), f32),
        "wc1": 0.1 * jax.random.normal(ks[5], (E, 64), f32),
        "bc1": jnp.zeros((64,), f32),
        "wc2": 0.1 * jax.random.normal(ks[6], (64, 1), f32),
        "bc2": jnp.zeros((1,), f32),
    }


def pack_params(p, n_actions):
    """Build the few large, lane-dense operands the kernel consumes (once,
    outside the kernel):

      w1p  (12, 16)  bf16   conv1 weight, rows (kh,kw,ci)
      w2p  (64, 32)  bf16   conv2 weight
      w3p  (128, 64) bf16   conv3 weight
      wh1p (E, 128)  bf16   [wa1 | wc1] fused head-1
      wh2p (128,128) bf16   block-diag [wa2 | wc2] padded to 128 output lanes
      bias (8, 128)  f32    rows: b1 / b2 / b3 / [ba1|bc1] / [ba2|bc2|0]

    NOTE: the heads assume NHWC flatten ordering of the embedding.  That equals
    torch's NCHW flatten only when the final spatial extent is 1x1 (true for
    the standard gridworld obs sizes); porting real PyTorch wa1/wc1 weights
    with H3*W3 > 1 would additionally require a row permutation here.
    """
    assert 1 <= n_actions <= _OUT_LANES - 1
    f32, bf16 = jnp.float32, jnp.bfloat16
    A = n_actions

    w1p = p["w1"].reshape(12, 16).astype(bf16)
    w2p = p["w2"].reshape(64, 32).astype(bf16)
    w3p = p["w3"].reshape(128, 64).astype(bf16)
    wh1p = jnp.concatenate([p["wa1"], p["wc1"]], axis=1).astype(bf16)   # (E, 128)

    wh2 = jnp.zeros((128, _OUT_LANES), f32)
    wh2 = wh2.at[0:64, 0:A].set(p["wa2"])
    wh2 = wh2.at[64:128, A].set(p["wc2"][:, 0])
    wh2p = wh2.astype(bf16)

    bias = jnp.zeros((8, 128), f32)
    bias = bias.at[0, 0:16].set(p["b1"])
    bias = bias.at[1, 0:32].set(p["b2"])
    bias = bias.at[2, 0:64].set(p["b3"])
    bias = bias.at[3, 0:64].set(p["ba1"])
    bias = bias.at[3, 64:128].set(p["bc1"])
    bias = bias.at[4, 0:A].set(p["ba2"])
    bias = bias.at[4, A].set(p["bc2"][0])

    return {"w1p": w1p, "w2p": w2p, "w3p": w3p, "wh1p": wh1p, "wh2p": wh2p,
            "bias": bias}


@functools.partial(jax.jit, static_argnames=("n_actions",))
def pnn_conv_base_forward(image_nhwc, memory, packed, *, n_actions):
    """Single-column PNNConvBase forward.

    image_nhwc: (B, H, W, 3) float32
    memory:     (B, 2 * image_embedding_size) float32 (passed through)
    returns: (log_probs (B, A), value (B,), memory)
    """
    assert 1 <= n_actions <= _OUT_LANES - 1
    B, H, W, C = image_nhwc.shape
    Ho1, Wo1, Hp, Wp, Ho2, Wo2, Ho3, Wo3 = _conv_sizes(H, W)
    P1 = Ho1 * Wo1
    E = Ho3 * Wo3 * 64

    # conv1 im2col hoisted into XLA (runs once, fused): lane-packed bf16
    # patches so the per-grid-step DMA is dense and the kernel's conv1 is a
    # single MXU dot with no 3-lane concats / relayouts.
    patches = jnp.concatenate(
        [image_nhwc[:, di:di + Ho1, dj:dj + Wo1, :]
         for di in (0, 1) for dj in (0, 1)],
        axis=-1).reshape(B * P1, 4 * C).astype(jnp.bfloat16)

    w1p, w2p, w3p, wh1p, wh2p, bias = (packed["w1p"], packed["w2p"],
                                       packed["w3p"], packed["wh1p"],
                                       packed["wh2p"], packed["bias"])

    TB = _choose_tb(B, H, W)
    grid = (pl.cdiv(B, TB),)

    # Advisory cost estimate for XLA's scheduler.
    flops = 2 * B * (Ho1 * Wo1 * 12 * 16 + Ho2 * Wo2 * 64 * 32
                     + Ho3 * Wo3 * 128 * 64 + E * 128 + 128 * _OUT_LANES)
    transcendentals = B * (128 + _OUT_LANES)
    bytes_accessed = (2 * (patches.size + w1p.size + w2p.size + w3p.size
                           + wh1p.size + wh2p.size)
                      + 4 * (bias.size + B * _OUT_LANES))

    kernel = functools.partial(_pnn_kernel, n_actions=n_actions,
                               conv1_hw=(Ho1, Wo1))

    out = pl.pallas_call(
        kernel,
        out_shape=jax.ShapeDtypeStruct((B, _OUT_LANES), jnp.float32),
        grid=grid,
        in_specs=[
            pl.BlockSpec((TB * P1, 4 * C), lambda b: (b, 0)),
            pl.BlockSpec(w1p.shape, lambda b: (0, 0)),
            pl.BlockSpec(w2p.shape, lambda b: (0, 0)),
            pl.BlockSpec(w3p.shape, lambda b: (0, 0)),
            pl.BlockSpec(wh1p.shape, lambda b: (0, 0)),
            pl.BlockSpec(wh2p.shape, lambda b: (0, 0)),
            pl.BlockSpec(bias.shape, lambda b: (0, 0)),
        ],
        out_specs=pl.BlockSpec((TB, _OUT_LANES), lambda b: (b, 0)),
        compiler_params=pltpu.CompilerParams(
            dimension_semantics=("parallel",),
            vmem_limit_bytes=_VMEM_LIMIT_BYTES),
        cost_estimate=pl.CostEstimate(flops=flops,
                                      transcendentals=transcendentals,
                                      bytes_accessed=bytes_accessed),
    )(patches, w1p, w2p, w3p, wh1p, wh2p, bias)

    log_probs = out[:, :n_actions]
    value = out[:, n_actions]
    return log_probs, value, memory


def _reference_forward(image, memory, params, n_actions):
    """Pure-JAX f32 reference of the same single-column forward (self-check)."""
    dn = ("NHWC", "HWIO", "NHWC")
    h1 = jax.nn.relu(lax.conv_general_dilated(image, params["w1"], (1, 1), "VALID",
                                              dimension_numbers=dn) + params["b1"])
    h1p = lax.reduce_window(h1, -jnp.inf, lax.max, (1, 2, 2, 1), (1, 2, 2, 1), "VALID")
    h2 = jax.nn.relu(lax.conv_general_dilated(h1p, params["w2"], (1, 1), "VALID",
                                              dimension_numbers=dn) + params["b2"])
    h3 = jax.nn.relu(lax.conv_general_dilated(h2, params["w3"], (1, 1), "VALID",
                                              dimension_numbers=dn) + params["b3"])
    emb = h3.reshape(h3.shape[0], -1)
    a1 = jnp.tanh(emb @ params["wa1"] + params["ba1"])
    logits = a1 @ params["wa2"] + params["ba2"]
    c1 = jnp.tanh(emb @ params["wc1"] + params["bc1"])
    value = (c1 @ params["wc2"] + params["bc2"])[:, 0]
    return jax.nn.log_softmax(logits, axis=1), value, memory


if __name__ == "__main__":
    key = jax.random.PRNGKey(0)
    k_img, k_par = jax.random.split(key)

    # 8x8x3 image -> embedding size ((8-1)//2 - 2)**2 * 64 = 64; batch=2; 4 actions.
    B, H, W, A = 2, 8, 8, 4
    E = ((H - 1) // 2 - 2) * ((W - 1) // 2 - 2) * 64

    image = jax.random.uniform(k_img, (B, H, W, 3), jnp.float32)
    memory = jnp.zeros((B, 2 * E), jnp.float32)
    params = make_params(k_par, H, W, A)
    packed = pack_params(params, A)

    log_probs, value, memory_out = pnn_conv_base_forward(image, memory, packed,
                                                         n_actions=A)
    jax.block_until_ready((log_probs, value, memory_out))

    assert log_probs.shape == (B, A)
    assert value.shape == (B,)
    assert memory_out.shape == (B, 2 * E)

    # Tolerance accounts for bf16 MXU inputs (f32 accumulation) vs f32 reference.
    ref_logp, ref_val, _ = _reference_forward(image, memory, params, A)
    assert jnp.allclose(log_probs, ref_logp, atol=5e-3, rtol=5e-3)
    assert jnp.allclose(value, ref_val, atol=5e-3, rtol=5e-3)

    print("KERNEL_OK")
</pallas_src>

<mosaic_0001>
module attributes {stable_mosaic.version = 11 : i64} {
  func.func @_pnn_kernel(%arg0: i32, %arg1: memref<98x12xbf16, #tpu.memory_space<vmem>>, %arg2: memref<12x16xbf16, #tpu.memory_space<vmem>>, %arg3: memref<64x32xbf16, #tpu.memory_space<vmem>>, %arg4: memref<128x64xbf16, #tpu.memory_space<vmem>>, %arg5: memref<64x128xbf16, #tpu.memory_space<vmem>>, %arg6: memref<128x128xbf16, #tpu.memory_space<vmem>>, %arg7: memref<8x128xf32, #tpu.memory_space<vmem>>, %arg8: memref<2x128xf32, #tpu.memory_space<vmem>>) attributes {dimension_semantics = [#tpu.dimension_semantics<parallel>], iteration_bounds = array<i64: 1>, scalar_prefetch = 0 : i64, scratch_operands = 0 : i64, tpu.core_type = #tpu.core_type<tc>, window_params = [{transform_indices = @transform_0, window_bounds = array<i64: 98, 12>}, {pipeline_mode = #tpu.pipeline_mode<synchronous>, transform_indices = @transform_1, window_bounds = array<i64: 12, 16>}, {pipeline_mode = #tpu.pipeline_mode<synchronous>, transform_indices = @transform_2, window_bounds = array<i64: 64, 32>}, {pipeline_mode = #tpu.pipeline_mode<synchronous>, transform_indices = @transform_3, window_bounds = array<i64: 128, 64>}, {pipeline_mode = #tpu.pipeline_mode<synchronous>, transform_indices = @transform_4, window_bounds = array<i64: 64, 128>}, {pipeline_mode = #tpu.pipeline_mode<synchronous>, transform_indices = @transform_5, window_bounds = array<i64: 128, 128>}, {pipeline_mode = #tpu.pipeline_mode<synchronous>, transform_indices = @transform_6, window_bounds = array<i64: 8, 128>}, {transform_indices = @transform_7, window_bounds = array<i64: 2, 128>}]} {
    %c0 = arith.constant 0 : index
    %c0_0 = arith.constant 0 : index
    %0 = vector.load %arg1[%c0, %c0_0] : memref<98x12xbf16, #tpu.memory_space<vmem>>, vector<98x12xbf16>
    %c0_1 = arith.constant 0 : index
    %c0_2 = arith.constant 0 : index
    %1 = vector.load %arg2[%c0_1, %c0_2] : memref<12x16xbf16, #tpu.memory_space<vmem>>, vector<12x16xbf16>
    %cst = arith.constant dense<0.000000e+00> : vector<98x16xf32>
    %2 = tpu.matmul %0, %1, %cst {dimension_numbers = #tpu.dot_dimension_numbers<[1], [0], [0], [1], [0, 0, 1, 1], [], []>} : vector<98x12xbf16>, vector<12x16xbf16>, vector<98x16xf32> -> vector<98x16xf32>
    %c0_3 = arith.constant 0 : index
    %c0_4 = arith.constant 0 : index
    %3 = vector.load %arg7[%c0_3, %c0_4] : memref<8x128xf32, #tpu.memory_space<vmem>>, vector<1x16xf32>
    %4 = vector.broadcast %3 : vector<1x16xf32> to vector<98x16xf32>
    %5 = arith.addf %2, %4 : vector<98x16xf32>
    %cst_5 = arith.constant 0.000000e+00 : f32
    %6 = vector.broadcast %cst_5 : f32 to vector<98x16xf32>
    %7 = arith.maximumf %5, %6 : vector<98x16xf32>
    %8 = vector.shape_cast %7 : vector<98x16xf32> to vector<2x7x7x16xf32>
    %9 = vector.extract_strided_slice %8 {offsets = [0, 0, 0, 0], sizes = [2, 6, 7, 16], strides = [1, 1, 1, 1]} : vector<2x7x7x16xf32> to vector<2x6x7x16xf32>
    %10 = vector.shape_cast %9 : vector<2x6x7x16xf32> to vector<6x2x7x16xf32>
    %11 = vector.extract_strided_slice %10 {offsets = [0, 0, 0, 0], sizes = [6, 1, 7, 16], strides = [1, 1, 1, 1]} : vector<6x2x7x16xf32> to vector<6x1x7x16xf32>
    %12 = vector.shape_cast %11 : vector<6x1x7x16xf32> to vector<6x7x16xf32>
    %13 = vector.extract_strided_slice %10 {offsets = [0, 1, 0, 0], sizes = [6, 1, 7, 16], strides = [1, 1, 1, 1]} : vector<6x2x7x16xf32> to vector<6x1x7x16xf32>
    %14 = vector.shape_cast %13 : vector<6x1x7x16xf32> to vector<6x7x16xf32>
    %15 = arith.maximumf %12, %14 : vector<6x7x16xf32>
    %16 = vector.extract_strided_slice %15 {offsets = [0, 0, 0], sizes = [6, 6, 16], strides = [1, 1, 1]} : vector<6x7x16xf32> to vector<6x6x16xf32>
    %17 = vector.shape_cast %16 : vector<6x6x16xf32> to vector<6x3x2x16xf32>
    %18 = vector.extract_strided_slice %17 {offsets = [0, 0, 0, 0], sizes = [6, 3, 1, 16], strides = [1, 1, 1, 1]} : vector<6x3x2x16xf32> to vector<6x3x1x16xf32>
    %19 = vector.shape_cast %18 : vector<6x3x1x16xf32> to vector<6x3x16xf32>
    %20 = vector.extract_strided_slice %17 {offsets = [0, 0, 1, 0], sizes = [6, 3, 1, 16], strides = [1, 1, 1, 1]} : vector<6x3x2x16xf32> to vector<6x3x1x16xf32>
    %21 = vector.shape_cast %20 : vector<6x3x1x16xf32> to vector<6x3x16xf32>
    %22 = arith.maximumf %19, %21 : vector<6x3x16xf32>
    %23 = vector.shape_cast %22 : vector<6x3x16xf32> to vector<2x3x3x16xf32>
    %c1 = arith.constant 1 : index
    %c0_6 = arith.constant 0 : index
    %24 = vector.load %arg7[%c1, %c0_6] : memref<8x128xf32, #tpu.memory_space<vmem>>, vector<1x32xf32>
    %25 = vector.extract_strided_slice %23 {offsets = [0, 0, 0, 0], sizes = [2, 2, 2, 16], strides = [1, 1, 1, 1]} : vector<2x3x3x16xf32> to vector<2x2x2x16xf32>
    %26 = vector.shape_cast %25 : vector<2x2x2x16xf32> to vector<8x16xf32>
    %27 = arith.truncf %26 : vector<8x16xf32> to vector<8x16xbf16>
    %c0_7 = arith.constant 0 : index
    %c0_8 = arith.constant 0 : index
    %28 = vector.load %arg3[%c0_7, %c0_8] : memref<64x32xbf16, #tpu.memory_space<vmem>>, vector<16x32xbf16>
    %cst_9 = arith.constant dense<0.000000e+00> : vector<8x32xf32>
    %29 = tpu.matmul %27, %28, %cst_9 {dimension_numbers = #tpu.dot_dimension_numbers<[1], [0], [0], [1], [0, 0, 1, 1], [], []>} : vector<8x16xbf16>, vector<16x32xbf16>, vector<8x32xf32> -> vector<8x32xf32>
    %30 = vector.extract_strided_slice %23 {offsets = [0, 0, 1, 0], sizes = [2, 2, 2, 16], strides = [1, 1, 1, 1]} : vector<2x3x3x16xf32> to vector<2x2x2x16xf32>
    %31 = vector.shape_cast %30 : vector<2x2x2x16xf32> to vector<8x16xf32>
    %32 = arith.truncf %31 : vector<8x16xf32> to vector<8x16xbf16>
    %c16 = arith.constant 16 : index
    %c0_10 = arith.constant 0 : index
    %33 = vector.load %arg3[%c16, %c0_10] : memref<64x32xbf16, #tpu.memory_space<vmem>>, vector<16x32xbf16>
    %cst_11 = arith.constant dense<0.000000e+00> : vector<8x32xf32>
    %34 = tpu.matmul %32, %33, %cst_11 {dimension_numbers = #tpu.dot_dimension_numbers<[1], [0], [0], [1], [0, 0, 1, 1], [], []>} : vector<8x16xbf16>, vector<16x32xbf16>, vector<8x32xf32> -> vector<8x32xf32>
    %35 = arith.addf %29, %34 : vector<8x32xf32>
    %36 = vector.extract_strided_slice %23 {offsets = [0, 1, 0, 0], sizes = [2, 2, 2, 16], strides = [1, 1, 1, 1]} : vector<2x3x3x16xf32> to vector<2x2x2x16xf32>
    %37 = vector.shape_cast %36 : vector<2x2x2x16xf32> to vector<8x16xf32>
    %38 = arith.truncf %37 : vector<8x16xf32> to vector<8x16xbf16>
    %c32 = arith.constant 32 : index
    %c0_12 = arith.constant 0 : index
    %39 = vector.load %arg3[%c32, %c0_12] : memref<64x32xbf16, #tpu.memory_space<vmem>>, vector<16x32xbf16>
    %cst_13 = arith.constant dense<0.000000e+00> : vector<8x32xf32>
    %40 = tpu.matmul %38, %39, %cst_13 {dimension_numbers = #tpu.dot_dimension_numbers<[1], [0], [0], [1], [0, 0, 1, 1], [], []>} : vector<8x16xbf16>, vector<16x32xbf16>, vector<8x32xf32> -> vector<8x32xf32>
    %41 = arith.addf %35, %40 : vector<8x32xf32>
    %42 = vector.extract_strided_slice %23 {offsets = [0, 1, 1, 0], sizes = [2, 2, 2, 16], strides = [1, 1, 1, 1]} : vector<2x3x3x16xf32> to vector<2x2x2x16xf32>
    %43 = vector.shape_cast %42 : vector<2x2x2x16xf32> to vector<8x16xf32>
    %44 = arith.truncf %43 : vector<8x16xf32> to vector<8x16xbf16>
    %c48 = arith.constant 48 : index
    %c0_14 = arith.constant 0 : index
    %45 = vector.load %arg3[%c48, %c0_14] : memref<64x32xbf16, #tpu.memory_space<vmem>>, vector<16x32xbf16>
    %cst_15 = arith.constant dense<0.000000e+00> : vector<8x32xf32>
    %46 = tpu.matmul %44, %45, %cst_15 {dimension_numbers = #tpu.dot_dimension_numbers<[1], [0], [0], [1], [0, 0, 1, 1], [], []>} : vector<8x16xbf16>, vector<16x32xbf16>, vector<8x32xf32> -> vector<8x32xf32>
    %47 = arith.addf %41, %46 : vector<8x32xf32>
    %48 = vector.broadcast %24 : vector<1x32xf32> to vector<8x32xf32>
    %49 = arith.addf %47, %48 : vector<8x32xf32>
    %cst_16 = arith.constant 0.000000e+00 : f32
    %50 = vector.broadcast %cst_16 : f32 to vector<8x32xf32>
    %51 = arith.maximumf %49, %50 : vector<8x32xf32>
    %52 = vector.shape_cast %51 : vector<8x32xf32> to vector<2x2x2x32xf32>
    %c2 = arith.constant 2 : index
    %c0_17 = arith.constant 0 : index
    %53 = vector.load %arg7[%c2, %c0_17] : memref<8x128xf32, #tpu.memory_space<vmem>>, vector<1x64xf32>
    %54 = vector.extract_strided_slice %52 {offsets = [0, 0, 0, 0], sizes = [2, 1, 1, 32], strides = [1, 1, 1, 1]} : vector<2x2x2x32xf32> to vector<2x1x1x32xf32>
    %55 = vector.shape_cast %54 : vector<2x1x1x32xf32> to vector<2x32xf32>
    %56 = arith.truncf %55 : vector<2x32xf32> to vector<2x32xbf16>
    %c0_18 = arith.constant 0 : index
    %c0_19 = arith.constant 0 : index
    %57 = vector.load %arg4[%c0_18, %c0_19] : memref<128x64xbf16, #tpu.memory_space<vmem>>, vector<32x64xbf16>
    %cst_20 = arith.constant dense<0.000000e+00> : vector<2x64xf32>
    %58 = tpu.matmul %56, %57, %cst_20 {dimension_numbers = #tpu.dot_dimension_numbers<[1], [0], [0], [1], [0, 0, 1, 1], [], []>} : vector<2x32xbf16>, vector<32x64xbf16>, vector<2x64xf32> -> vector<2x64xf32>
    %59 = vector.extract_strided_slice %52 {offsets = [0, 0, 1, 0], sizes = [2, 1, 1, 32], strides = [1, 1, 1, 1]} : vector<2x2x2x32xf32> to vector<2x1x1x32xf32>
    %60 = vector.shape_cast %59 : vector<2x1x1x32xf32> to vector<2x32xf32>
    %61 = arith.truncf %60 : vector<2x32xf32> to vector<2x32xbf16>
    %c32_21 = arith.constant 32 : index
    %c0_22 = arith.constant 0 : index
    %62 = vector.load %arg4[%c32_21, %c0_22] : memref<128x64xbf16, #tpu.memory_space<vmem>>, vector<32x64xbf16>
    %cst_23 = arith.constant dense<0.000000e+00> : vector<2x64xf32>
    %63 = tpu.matmul %61, %62, %cst_23 {dimension_numbers = #tpu.dot_dimension_numbers<[1], [0], [0], [1], [0, 0, 1, 1], [], []>} : vector<2x32xbf16>, vector<32x64xbf16>, vector<2x64xf32> -> vector<2x64xf32>
    %64 = arith.addf %58, %63 : vector<2x64xf32>
    %65 = vector.extract_strided_slice %52 {offsets = [0, 1, 0, 0], sizes = [2, 1, 1, 32], strides = [1, 1, 1, 1]} : vector<2x2x2x32xf32> to vector<2x1x1x32xf32>
    %66 = vector.shape_cast %65 : vector<2x1x1x32xf32> to vector<2x32xf32>
    %67 = arith.truncf %66 : vector<2x32xf32> to vector<2x32xbf16>
    %c64 = arith.constant 64 : index
    %c0_24 = arith.constant 0 : index
    %68 = vector.load %arg4[%c64, %c0_24] : memref<128x64xbf16, #tpu.memory_space<vmem>>, vector<32x64xbf16>
    %cst_25 = arith.constant dense<0.000000e+00> : vector<2x64xf32>
    %69 = tpu.matmul %67, %68, %cst_25 {dimension_numbers = #tpu.dot_dimension_numbers<[1], [0], [0], [1], [0, 0, 1, 1], [], []>} : vector<2x32xbf16>, vector<32x64xbf16>, vector<2x64xf32> -> vector<2x64xf32>
    %70 = arith.addf %64, %69 : vector<2x64xf32>
    %71 = vector.extract_strided_slice %52 {offsets = [0, 1, 1, 0], sizes = [2, 1, 1, 32], strides = [1, 1, 1, 1]} : vector<2x2x2x32xf32> to vector<2x1x1x32xf32>
    %72 = vector.shape_cast %71 : vector<2x1x1x32xf32> to vector<2x32xf32>
    %73 = arith.truncf %72 : vector<2x32xf32> to vector<2x32xbf16>
    %c96 = arith.constant 96 : index
    %c0_26 = arith.constant 0 : index
    %74 = vector.load %arg4[%c96, %c0_26] : memref<128x64xbf16, #tpu.memory_space<vmem>>, vector<32x64xbf16>
    %cst_27 = arith.constant dense<0.000000e+00> : vector<2x64xf32>
    %75 = tpu.matmul %73, %74, %cst_27 {dimension_numbers = #tpu.dot_dimension_numbers<[1], [0], [0], [1], [0, 0, 1, 1], [], []>} : vector<2x32xbf16>, vector<32x64xbf16>, vector<2x64xf32> -> vector<2x64xf32>
    %76 = arith.addf %70, %75 : vector<2x64xf32>
    %77 = vector.broadcast %53 : vector<1x64xf32> to vector<2x64xf32>
    %78 = arith.addf %76, %77 : vector<2x64xf32>
    %cst_28 = arith.constant 0.000000e+00 : f32
    %79 = vector.broadcast %cst_28 : f32 to vector<2x64xf32>
    %80 = arith.maximumf %78, %79 : vector<2x64xf32>
    %81 = vector.shape_cast %80 : vector<2x64xf32> to vector<2x1x1x64xf32>
    %82 = vector.shape_cast %81 : vector<2x1x1x64xf32> to vector<2x64xf32>
    %83 = arith.truncf %82 : vector<2x64xf32> to vector<2x64xbf16>
    %c0_29 = arith.constant 0 : index
    %c0_30 = arith.constant 0 : index
    %84 = vector.load %arg5[%c0_29, %c0_30] : memref<64x128xbf16, #tpu.memory_space<vmem>>, vector<64x128xbf16>
    %cst_31 = arith.constant dense<0.000000e+00> : vector<2x128xf32>
    %85 = tpu.matmul %83, %84, %cst_31 {dimension_numbers = #tpu.dot_dimension_numbers<[1], [0], [0], [1], [0, 0, 1, 1], [], []>} : vector<2x64xbf16>, vector<64x128xbf16>, vector<2x128xf32> -> vector<2x128xf32>
    %c3 = arith.constant 3 : index
    %c0_32 = arith.constant 0 : index
    %86 = vector.load %arg7[%c3, %c0_32] : memref<8x128xf32, #tpu.memory_space<vmem>>, vector<1x128xf32>
    %87 = vector.broadcast %86 : vector<1x128xf32> to vector<2x128xf32>
    %88 = arith.addf %85, %87 : vector<2x128xf32>
    %89 = math.tanh %88 : vector<2x128xf32>
    %90 = arith.truncf %89 : vector<2x128xf32> to vector<2x128xbf16>
    %c0_33 = arith.constant 0 : index
    %c0_34 = arith.constant 0 : index
    %91 = vector.load %arg6[%c0_33, %c0_34] : memref<128x128xbf16, #tpu.memory_space<vmem>>, vector<128x128xbf16>
    %cst_35 = arith.constant dense<0.000000e+00> : vector<2x128xf32>
    %92 = tpu.matmul %90, %91, %cst_35 {dimension_numbers = #tpu.dot_dimension_numbers<[1], [0], [0], [1], [0, 0, 1, 1], [], []>} : vector<2x128xbf16>, vector<128x128xbf16>, vector<2x128xf32> -> vector<2x128xf32>
    %c4 = arith.constant 4 : index
    %c0_36 = arith.constant 0 : index
    %93 = vector.load %arg7[%c4, %c0_36] : memref<8x128xf32, #tpu.memory_space<vmem>>, vector<1x128xf32>
    %94 = vector.broadcast %93 : vector<1x128xf32> to vector<2x128xf32>
    %95 = arith.addf %92, %94 : vector<2x128xf32>
    %96 = tpu.iota {dimensions = array<i32: 1>} : vector<2x128xi32>
    %c4_i32 = arith.constant 4 : i32
    %97 = vector.broadcast %c4_i32 : i32 to vector<2x128xi32>
    %98 = arith.cmpi slt, %96, %97 : vector<2x128xi32>
    %cst_37 = arith.constant 0xFF800000 : f32
    %99 = vector.broadcast %cst_37 : f32 to vector<2x128xf32>
    %100 = arith.select %98, %95, %99 : vector<2x128xi1>, vector<2x128xf32>
    %cst_38 = arith.constant dense<0xFF800000> : vector<2xf32>
    %101 = vector.multi_reduction <maximumf>, %100, %cst_38 [1] : vector<2x128xf32> to vector<2xf32>
    %102 = vector.shape_cast %101 : vector<2xf32> to vector<2x1xf32>
    %103 = vector.broadcast %102 : vector<2x1xf32> to vector<2x128xf32>
    %104 = arith.subf %95, %103 : vector<2x128xf32>
    %105 = math.exp %104 : vector<2x128xf32>
    %cst_39 = arith.constant 0.000000e+00 : f32
    %106 = vector.broadcast %cst_39 : f32 to vector<2x128xf32>
    %107 = arith.select %98, %105, %106 : vector<2x128xi1>, vector<2x128xf32>
    %cst_40 = arith.constant dense<0.000000e+00> : vector<2xf32>
    %108 = vector.multi_reduction <add>, %107, %cst_40 [1] : vector<2x128xf32> to vector<2xf32>
    %109 = vector.shape_cast %108 : vector<2xf32> to vector<2x1xf32>
    %110 = math.log %109 : vector<2x1xf32>
    %111 = vector.broadcast %110 : vector<2x1xf32> to vector<2x128xf32>
    %112 = arith.subf %104, %111 : vector<2x128xf32>
    %113 = arith.select %98, %112, %95 : vector<2x128xi1>, vector<2x128xf32>
    %c0_41 = arith.constant 0 : index
    %c0_42 = arith.constant 0 : index
    %114 = vector.load %arg8[%c0_41, %c0_42] : memref<2x128xf32, #tpu.memory_space<vmem>>, vector<2x128xf32>
    tpu.vector_store %arg8[%c0_41, %c0_42], %113 {strides = array<i32>} : memref<2x128xf32, #tpu.memory_space<vmem>>, vector<2x128xf32>,
    return
  }
  func.func @transform_0(%arg0: i32) -> (i32, i32) {
    %c0_i32 = arith.constant 0 : i32
    %c0_i32_0 = arith.constant 0 : i32
    return %arg0, %c0_i32 : i32, i32
  }
  func.func @transform_1(%arg0: i32) -> (i32, i32) {
    %c0_i32 = arith.constant 0 : i32
    %c0_i32_0 = arith.constant 0 : i32
    %c0_i32_1 = arith.constant 0 : i32
    return %c0_i32, %c0_i32_0 : i32, i32
  }
  func.func @transform_2(%arg0: i32) -> (i32, i32) {
    %c0_i32 = arith.constant 0 : i32
    %c0_i32_0 = arith.constant 0 : i32
    %c0_i32_1 = arith.constant 0 : i32
    return %c0_i32, %c0_i32_0 : i32, i32
  }
  func.func @transform_3(%arg0: i32) -> (i32, i32) {
    %c0_i32 = arith.constant 0 : i32
    %c0_i32_0 = arith.constant 0 : i32
    %c0_i32_1 = arith.constant 0 : i32
    return %c0_i32, %c0_i32_0 : i32, i32
  }
  func.func @transform_4(%arg0: i32) -> (i32, i32) {
    %c0_i32 = arith.constant 0 : i32
    %c0_i32_0 = arith.constant 0 : i32
    %c0_i32_1 = arith.constant 0 : i32
    return %c0_i32, %c0_i32_0 : i32, i32
  }
  func.func @transform_5(%arg0: i32) -> (i32, i32) {
    %c0_i32 = arith.constant 0 : i32
    %c0_i32_0 = arith.constant 0 : i32
    %c0_i32_1 = arith.constant 0 : i32
    return %c0_i32, %c0_i32_0 : i32, i32
  }
  func.func @transform_6(%arg0: i32) -> (i32, i32) {
    %c0_i32 = arith.constant 0 : i32
    %c0_i32_0 = arith.constant 0 : i32
    %c0_i32_1 = arith.constant 0 : i32
    return %c0_i32, %c0_i32_0 : i32, i32
  }
  func.func @transform_7(%arg0: i32) -> (i32, i32) {
    %c0_i32 = arith.constant 0 : i32
    %c0_i32_0 = arith.constant 0 : i32
    return %arg0, %c0_i32 : i32, i32
  }
}

</mosaic_0001>

<bundles_post_ra>
// kernel: pnn_conv_base_forward.1
= control target key start
LH: loop header
LB: loop body
LE: loop exit
PB: predicated region body
PF: predicated region fallthrough
CT: control target
= control target key end

     0   :  { %vm107_vm0 = vcmask 1045504   ;;  %v1967_v0 = vmov 0.0   ;;  %vm1968_vm1 = vmmov 0   ;;  %vm85_vm2 = vcmask 97280   ;;  %s2376_s1 = inlined_call_operand.vmem [shape: bf16[12,16], index: 1, kind: input, shape index: {}]   ;;  %s2377_s0 = inlined_call_operand.vmem [shape: bf16[98,12], index: 0, kind: input, shape index: {}]   ;;  %s2378_s2 = inlined_call_operand.vmem [shape: bf16[64,32], index: 2, kind: input, shape index: {}]   ;;  %s2379_s6 = inlined_call_operand.vmem [shape: f32[8,128], index: 6, kind: input, shape index: {}]   ;;  %s2380_s3 = inlined_call_operand.vmem [shape: bf16[128,64], index: 3, kind: input, shape index: {}]   ;;  %s2381_s4 = inlined_call_operand.vmem [shape: bf16[64,128], index: 4, kind: input, shape index: {}]   ;;  %s2382_s5 = inlined_call_operand.vmem [shape: bf16[128,128], index: 5, kind: input, shape index: {}]   ;;  %s2383_s7 = inlined_call_operand.vmem [shape: f32[2,128], index: 7, kind: output, shape index: {}]  }
   0x1   :  { %1807 = vmatprep.subr.bf16.mxu0 %v1967_v0  ;;  %v1929_v1 = vld [vmem:[%s2376_s1] sm:$0x3f]   ;;  %1809 = vmatprep.mubr.msk.bf16.mxu0 %vm1968_vm1, %v1967_v0  ;;  %v1931_v4 = vld [vmem:[%s2377_s0 + $0x8] sm:$0xff]   ;;  %v1932_v5 = vld [vmem:[%s2377_s0 + $0x10] sm:$0xff]   ;;  %v1969_v10 = vmov 1966171168   ;;  %v226_v12 = vlaneseq }
   0x2   :  { %1837 = vmatprep.subr.bf16.mxu1 %v1967_v0  ;;  %1839 = vmatprep.mubr.msk.bf16.mxu1 %vm1968_vm1, %v1967_v0  ;;  %v109_v2 = vsel %vm107_vm0, %v1929_v1, 0  ;;  %v1930_v3 = vld [vmem:[%s2377_s0] sm:$0xff]   ;;  %v1933_v6 = vld [vmem:[%s2377_s0 + $0x18] sm:$0xff]   ;;  %v1935_v8 = vld [vmem:[%s2377_s0 + $0x28] sm:$0xff]   ;;  %v224_v11 = vunpack.c.l.s4 %v1969_v10  ;;  %vm902_vm3 = vcmask 1041409   ;;  %vm905_vm4 = vcmask 1042434  }
   0x3   :  { %1808 = vmatpush3.bf16.msra.mxu0 %v109_v2  ;;  %v1934_v7 = vld [vmem:[%s2377_s0 + $0x20] sm:$0xff]   ;;  %v1936_v9 = vld [vmem:[%s2378_s2 + $0x8] sm:$0xff]   ;;  %v2062_v14 = vshrl.u32 %v226_v12, 7  ;;  %vm908_vm5 = vcmask 1043459   ;;  %vm911_vm6 = vcmask 1044484   ;;  %vm914_vm7 = vcmask 1045509  }
   0x4   :  { %1905 = vmatprep.subr.bf16.mxu0 %v1967_v0  ;;  %1838 = vmatpush3.bf16.msra.mxu1 %v1936_v9  ;;  %v225_v13 = vunpack.c.0.s8 %v224_v11  ;;  %v2067_v15 = vld [vmem:[%s2379_s6] ss:$0 sm:$0xff]  ;;  %vm917_vm8 = vcmask 1046534   ;;  %vm920_vm9 = vcmask 1047559   ;;  %vm929_vm10 = vcmask 130048  }
   0x5   :  { %1843 = vmatprep.subr.bf16.mxu1 %v1967_v0  ;;  %vm1255_vm11 = vcmask 261120   ;;  %vm1533_vm12 = vcmask 523264   ;;  %vm1692_vm14 = vcmask 1041408  }
   0x6   :  { %1810 = vmatmul.mubr.msk.bf16.vlgmr.msra.gmra.mrb[0].mxu0 %vm85_vm2, %v1930_v3  ;;  %v2071_v18 = vsub.s32 %v225_v13, %v2062_v14 }
   0x7   :  { %1813 = vmatprep.mubr.msk.bf16.mxu0 %vm1968_vm1, %v1967_v0 }
   0xe   :  { %1814 = vmatmul.mubr.msk.bf16.gmra.mrb[4].mxu0 %vm85_vm2, %v1931_v4 }
   0xf   :  { %1817 = vmatprep.mubr.msk.bf16.mxu0 %vm1968_vm1, %v1967_v0 }
  0x16   :  { %1818 = vmatmul.mubr.msk.bf16.gmra.mrb[8].mxu0 %vm85_vm2, %v1932_v5 }
  0x17   :  { %1821 = vmatprep.mubr.msk.bf16.mxu0 %vm1968_vm1, %v1967_v0 }
  0x1e   :  { %1822 = vmatmul.mubr.msk.bf16.gmra.mrb[12].mxu0 %vm85_vm2, %v1933_v6 }
  0x1f   :  { %1825 = vmatprep.mubr.msk.bf16.mxu0 %vm1968_vm1, %v1967_v0 }
  0x26   :  { %1826 = vmatmul.mubr.msk.bf16.gmra.mrb[16].mxu0 %vm85_vm2, %v1934_v7 }
  0x27   :  { %1829 = vmatprep.mubr.msk.bf16.mxu0 %vm1968_vm1, %v1967_v0 }
  0x2e   :  { %1830 = vmatmul.mubr.msk.bf16.gmra.mrb[20].mxu0 %vm85_vm2, %v1935_v8 }
  0x2f   :  { %1833 = vmatprep.mubr.msk.bf16.mxu0 %vm1968_vm1, %v1967_v0 }
  0xd9   :  { %v145_v16 = vpop.f32.mrb[0].mxu0 }
  0xda   :  { %v146_v17 = vadd.f32 %v2067_v15, %v145_v16  ;;  %v1811_v19 = vpop.f32.mrb[1].mxu0 }
  0xdb   :  { %v148_v20 = vpop.f32.mrb[2].mxu0 }
  0xdc   :  { %v198_v21 = vmax.f32 %v146_v17, 0.0  ;;  %v149_v22 = vadd.f32 %v2067_v15, %v148_v20  ;;  %v1812_v23 = vpop.f32.mrb[3].mxu0 }
  0xde   :  { %v222_v24 = vcombine.high %v198_v21, %v198_v21  ;;  %v229_v25 = vrot.slane %v198_v21, %v2071_v18  ;;  %v199_v26 = vmax.f32 %v149_v22, 0.0 }
  0xe0   :  { %v236_v27 = vrot.slane %v222_v24, %v2071_v18  ;;  %v237_v28 = vcombine.high %v229_v25, %v229_v25  ;;  %v245_v29 = vrot.slane %v229_v25, %v2071_v18  ;;  %v270_v30 = vcombine.high %v199_v26, %v199_v26 }
  0xe1   :  { %v277_v31 = vrot.slane %v199_v26, %v2071_v18  ;;  %v153_v32 = vpop.f32.mrb[4].mxu0 }
  0xe2   :  { %v238_v33 = vcombine.high %v236_v27, %v236_v27  ;;  %v252_v34 = vrot.slane %v236_v27, %v2071_v18  ;;  %v259_v35 = vrot.slane %v237_v28, %v2071_v18  ;;  %v1815_v36 = vpop.f32.mrb[5].mxu0  ;;  %v284_v37 = vrot.slane %v270_v30, %v2071_v18 }
  0xe3   :  { %v285_v38 = vcombine.high %v277_v31, %v277_v31  ;;  %v293_v39 = vrot.slane %v277_v31, %v2071_v18  ;;  %v154_v40 = vadd.f32 %v2067_v15, %v153_v32  ;;  %v156_v41 = vpop.f32.mrb[6].mxu0  ;;  %v267_v43 = vcombine.high %v245_v29, %v245_v29 }
  0xe4   :  { %v266_v42 = vrot.slane %v238_v33, %v2071_v18  ;;  %v268_v44 = vcombine.high %v259_v35, %v259_v35  ;;  %v157_v45 = vadd.f32 %v2067_v15, %v156_v41  ;;  %v1816_v46 = vpop.f32.mrb[7].mxu0  ;;  %v286_v47 = vcombine.high %v284_v37, %v284_v37 }
  0xe5   :  { %v300_v48 = vrot.slane %v284_v37, %v2071_v18  ;;  %v307_v49 = vrot.slane %v285_v38, %v2071_v18  ;;  %v315_v50 = vcombine.high %v293_v39, %v293_v39  ;;  %v815_v52 = vmax.f32 %v259_v35, %v293_v39 }
  0xe6   :  { %v269_v51 = vcombine.high %v266_v42, %v266_v42  ;;  %v200_v53 = vmax.f32 %v154_v40, 0.0  ;;  %v201_v54 = vmax.f32 %v157_v45, 0.0  ;;  %v314_v55 = vrot.slane %v286_v47, %v2071_v18 }
  0xe7   :  { %v316_v56 = vcombine.high %v300_v48, %v300_v48  ;;  %v317_v57 = vcombine.high %v307_v49, %v307_v49  ;;  %v816_v58 = vmax.f32 %v267_v43, %v307_v49  ;;  %v817_v60 = vmax.f32 %v268_v44, %v315_v50 }
  0xe8   :  { %v814_v59 = vmax.f32 %v245_v29, %v269_v51  ;;  %v819_v61 = vmax.f32 %v266_v42, %v300_v48  ;;  %v319_v62 = vcombine.high %v200_v53, %v200_v53  ;;  %v318_v63 = vcombine.high %v314_v55, %v314_v55 }
  0xe9   :  { %v818_v1 = vmax.f32 %v252_v34, %v317_v57  ;;  %v326_v2 = vrot.slane %v200_v53, %v2071_v18  ;;  %v368_v3 = vcombine.high %v201_v54, %v201_v54  ;;  %v161_v4 = vpop.f32.mrb[8].mxu0  ;;  %v851_v6 = vmax.f32 %v816_v58, %v817_v60 }
  0xea   :  { %v850_v5 = vmax.f32 %v814_v59, %v815_v52  ;;  %v333_v7 = vrot.slane %v319_v62, %v2071_v18  ;;  %v375_v8 = vrot.slane %v201_v54, %v2071_v18  ;;  %v1819_v9 = vpop.f32.mrb[9].mxu0  ;;  %v162_v57 = vadd.f32 %v2067_v15, %v161_v4 }
  0xeb   :  { %v852_v10 = vmax.f32 %v818_v1, %v819_v61  ;;  %v334_v11 = vcombine.high %v326_v2, %v326_v2  ;;  %v342_v13 = vrot.slane %v326_v2, %v2071_v18  ;;  %v382_v16 = vrot.slane %v368_v3, %v2071_v18  ;;  %v164_v17 = vpop.f32.mrb[10].mxu0 }
  0xec   :  { %v869_v19 = vpack.c.bf16 %v850_v5, %v850_v5  ;;  %v870_v20 = vpack.c.bf16 %v851_v6, %v851_v6  ;;  %v335_v21 = vcombine.high %v333_v7, %v333_v7  ;;  %v349_v22 = vrot.slane %v333_v7, %v2071_v18  ;;  %v1820_v23 = vpop.f32.mrb[11].mxu0 }
  0xed   :  { %v879_v24 = vpack.c.bf16 %v852_v10, %v852_v10  ;;  %v356_v25 = vrot.slane %v334_v11, %v2071_v18  ;;  %v364_v26 = vcombine.high %v342_v13, %v342_v13  ;;  %v383_v27 = vcombine.high %v375_v8, %v375_v8 }
  0xee   :  { %v893_v28 = vunpack.c.l.b16 %v870_v20  ;;  %v977_v29 = vunpack.c.l.b16 %v869_v19  ;;  %v363_v30 = vrot.slane %v335_v21, %v2071_v18  ;;  %v365_v31 = vcombine.high %v349_v22, %v349_v22 }
  0xef   :  { %v894_v32 = vunpack.c.l.b16 %v879_v24  ;;  %v366_v33 = vcombine.high %v356_v25, %v356_v25  ;;  %v384_v34 = vcombine.high %v382_v16, %v382_v16  ;;  %v391_v35 = vrot.slane %v375_v8, %v2071_v18 }
  0xf0   :  { %v981_v36 = vrot.slane %v893_v28, 7  ;;  %v367_v37 = vcombine.high %v363_v30, %v363_v30  ;;  %v820_v38 = vmax.f32 %v316_v56, %v363_v30  ;;  %v821_v39 = vmax.f32 %v318_v63, %v365_v31 }
  0xf1   :  { %v901_v40 = vrot.slane %v894_v32, 7  ;;  %v2098_v41 = vrot.slane %v382_v16, %v2071_v18  ;;  %v405_v42 = vrot.slane %v383_v27, %v2071_v18  ;;  %v2102_v43 = vrot.slane %v384_v34, %v2071_v18  ;;  %v169_v44 = vpop.f32.mrb[12].mxu0 }
  0xf2   :  { %v982_v45 = vsel %vm902_vm3, %v981_v36, %v977_v29  ;;  %v822_v46 = vmax.f32 %v342_v13, %v367_v37  ;;  %v853_v47 = vmax.f32 %v820_v38, %v821_v39  ;;  %v413_v48 = vcombine.high %v391_v35, %v391_v35  ;;  %v1823_v49 = vpop.f32.mrb[13].mxu0 }
  0xf3   :  { %v2106_v50 = vsel %vm902_vm3, %v901_v40, %v893_v28  ;;  %v414_v51 = vcombine.high %v2098_v41, %v2098_v41  ;;  %v823_v52 = vmax.f32 %v356_v25, %v391_v35  ;;  %v172_v53 = vpop.f32.mrb[14].mxu0  ;;  %v824_v55 = vmax.f32 %v364_v26, %v405_v42 }
  0xf4   :  { %v871_v54 = vpack.c.bf16 %v853_v47, %v853_v47  ;;  %v825_v56 = vmax.f32 %v366_v33, %v413_v48  ;;  %v1824_v58 = vpop.f32.mrb[15].mxu0  ;;  %v165_v60 = vadd.f32 %v2067_v15, %v164_v17  ;;  %v170_v61 = vadd.f32 %v2067_v15, %v169_v44 }
  0xf5   :  { %v854_v59 = vmax.f32 %v822_v46, %v823_v52  ;;  %v173_v62 = vadd.f32 %v2067_v15, %v172_v53  ;;  %v415_v1 = vcombine.high %v2102_v43, %v2102_v43  ;;  %v202_v3 = vmax.f32 %v162_v57, 0.0 }
  0xf6   :  { %v978_v63 = vunpack.c.l.b16 %v871_v54  ;;  %v855_v2 = vmax.f32 %v824_v55, %v825_v56  ;;  %v203_v6 = vmax.f32 %v165_v60, 0.0  ;;  %v204_v7 = vmax.f32 %v170_v61, 0.0 }
  0xf7   :  { %v872_v5 = vpack.c.bf16 %v854_v59, %v854_v59  ;;  %v205_v8 = vmax.f32 %v173_v62, 0.0  ;;  %v416_v10 = vcombine.high %v202_v3, %v202_v3  ;;  %v423_v11 = vrot.slane %v202_v3, %v2071_v18 }
  0xf8   :  { %v983_v9 = vrot.slane %v978_v63, 6  ;;  %v880_v4 = vpack.c.bf16 %v855_v2, %v855_v2  ;;  %v470_v16 = vrot.slane %v203_v6, %v2071_v18  ;;  %v478_v17 = vcombine.high %v204_v7, %v204_v7 }
  0xf9   :  { %v2117_v13 = vunpack.c.l.b16 %v872_v5  ;;  %v485_v19 = vrot.slane %v204_v7, %v2071_v18  ;;  %v177_v20 = vpop.f32.mrb[16].mxu0  ;;  %v430_v23 = vrot.slane %v416_v10, %v2071_v18  ;;  %v431_v24 = vcombine.high %v423_v11, %v423_v11 }
  0xfa   :  { %v984_v21 = vsel %vm905_vm4, %v983_v9, %v982_v45  ;;  %v2122_v22 = vunpack.c.l.b16 %v880_v4  ;;  %v1827_v25 = vpop.f32.mrb[17].mxu0  ;;  %v439_v29 = vrot.slane %v423_v11, %v2071_v18  ;;  %v477_v38 = vrot.slane %v470_v16, %v2071_v18 }
  0xfb   :  { %v904_v26 = vrot.slane %v2117_v13, 6  ;;  %v985_v27 = vrot.slane %v2117_v13, 5  ;;  %v1059_v28 = vrot.slane %v2117_v13, 7  ;;  %v2129_v30 = vpop.f32.mrb[18].mxu0  ;;  %v432_v33 = vcombine.high %v430_v23, %v430_v23 }
  0xfc   :  { %v907_v31 = vrot.slane %v2122_v22, 5  ;;  %v1132_v32 = vrot.slane %v2122_v22, 7  ;;  %v446_v34 = vrot.slane %v430_v23, %v2071_v18  ;;  %v1828_v35 = vpop.f32.mrb[19].mxu0  ;;  %v453_v36 = vrot.slane %v431_v24, %v2071_v18 }
  0xfd   :  { %v1060_v37 = vsel %vm902_vm3, %v1059_v28, %v978_v63  ;;  %v492_v39 = vrot.slane %v478_v17, %v2071_v18  ;;  %v460_v42 = vrot.slane %v432_v33, %v2071_v18  ;;  %v493_v48 = vcombine.high %v485_v19, %v485_v19 }
  0xfe   :  { %v1133_v40 = vsel %vm902_vm3, %v1132_v32, %v2117_v13  ;;  %v461_v44 = vcombine.high %v446_v34, %v446_v34  ;;  %v827_v45 = vmax.f32 %v2102_v43, %v446_v34  ;;  %v462_v46 = vcombine.high %v453_v36, %v453_v36 }
  0xff   :  { %v831_v47 = vmax.f32 %v453_v36, %v477_v38  ;;  %v494_v49 = vcombine.high %v492_v39, %v492_v39  ;;  %v463_v52 = vcombine.high %v460_v42, %v460_v42  ;;  %v828_v53 = vmax.f32 %v414_v51, %v460_v42 }
 0x100   :  { %v829_v54 = vmax.f32 %v415_v1, %v461_v44  ;;  %v501_v55 = vrot.slane %v485_v19, %v2071_v18  ;;  %v826_v56 = vmax.f32 %v2098_v41, %v462_v46  ;;  %v508_v57 = vrot.slane %v492_v39, %v2071_v18 }
 0x101   :  { %v515_v58 = vrot.slane %v493_v48, %v2071_v18  ;;  %v522_v59 = vrot.slane %v494_v49, %v2071_v18  ;;  %v185_v60 = vpop.f32.mrb[20].mxu0  ;;  %v830_v61 = vmax.f32 %v439_v29, %v463_v52  ;;  %v526_v63 = vcombine.high %v205_v8, %v205_v8 }
 0x102   :  { %v857_v43 = vmax.f32 %v828_v53, %v829_v54  ;;  %v523_v62 = vcombine.high %v501_v55, %v501_v55  ;;  %v1831_v2 = vpop.f32.mrb[21].mxu0  ;;  %v856_v3 = vmax.f32 %v826_v56, %v827_v45  ;;  %v524_v5 = vcombine.high %v508_v57, %v508_v57 }
 0x103   :  { %v525_v51 = vcombine.high %v515_v58, %v515_v58  ;;  %v533_v1 = vrot.slane %v205_v8, %v2071_v18  ;;  %v188_v6 = vpop.f32.mrb[22].mxu0  ;;  %v858_v41 = vmax.f32 %v830_v61, %v831_v47  ;;  %v540_v9 = vrot.slane %v526_v63, %v2071_v18 }
 0x104   :  { %v1046_v7 = vpack.c.bf16 %v857_v43, %v857_v43  ;;  %v986_v4 = vsel %vm908_vm5, %v985_v27, %v984_v21  ;;  %v1832_v10 = vpop.f32.mrb[23].mxu0  ;;  %v1045_v11 = vpack.c.bf16 %v856_v3, %v856_v3  ;;  %v178_v19 = vadd.f32 %v2067_v15, %v177_v20 }
 0x105   :  { %v541_v16 = vcombine.high %v533_v1, %v533_v1  ;;  %v549_v17 = vrot.slane %v533_v1, %v2071_v18  ;;  %v1124_v24 = vpack.c.bf16 %v858_v41, %v858_v41  ;;  %v542_v25 = vcombine.high %v540_v9, %v540_v9 }
 0x106   :  { %v1056_v23 = vunpack.c.l.b16 %v1046_v7  ;;  %v556_v28 = vrot.slane %v540_v9, %v2071_v18  ;;  %v1055_v8 = vunpack.c.l.b16 %v1045_v11  ;;  %v206_v54 = vmax.f32 %v178_v19, 0.0 }
 0x107   :  { %v563_v29 = vrot.slane %v541_v16, %v2071_v18  ;;  %v571_v32 = vcombine.high %v549_v17, %v549_v17  ;;  %v832_v33 = vmax.f32 %v515_v58, %v549_v17  ;;  %v1130_v21 = vunpack.c.l.b16 %v1124_v24 }
 0x108   :  { %v1063_v34 = vrot.slane %v1056_v23, 5  ;;  %v1134_v35 = vrot.slane %v1056_v23, 6  ;;  %v570_v27 = vrot.slane %v542_v25, %v2071_v18  ;;  %v1061_v36 = vrot.slane %v1055_v8, 6 }
 0x109   :  { %v572_v38 = vcombine.high %v563_v29, %v563_v29  ;;  %v833_v39 = vmax.f32 %v523_v62, %v563_v29  ;;  %v834_v20 = vmax.f32 %v525_v51, %v571_v32  ;;  %v1136_v44 = vrot.slane %v1130_v21, 5 }
 0x10a   :  { %v1135_v42 = vsel %vm905_vm4, %v1134_v35, %v1133_v40  ;;  %v573_v45 = vcombine.high %v570_v27, %v570_v27  ;;  %v836_v46 = vmax.f32 %v522_v59, %v556_v28  ;;  %v1062_v47 = vsel %vm905_vm4, %v1061_v36, %v1060_v37 }
 0x10b   :  { %v835_v48 = vmax.f32 %v508_v57, %v572_v38  ;;  %v837_v49 = vmax.f32 %v524_v5, %v570_v27  ;;  %v859_v52 = vmax.f32 %v832_v33, %v833_v39  ;;  %v2158_v53 = vsel %vm908_vm5, %v1136_v44, %v1135_v42 }
 0x10c   :  { %v2161_v55 = vsel %vm908_vm5, %v1063_v34, %v1062_v47  ;;  %v181_v56 = vadd.f32 %v2067_v15, %v2129_v30  ;;  %v186_v59 = vadd.f32 %v2067_v15, %v185_v60  ;;  %v574_v43 = vcombine.high %v206_v54, %v206_v54 }
 0x10d   :  { %v860_v58 = vmax.f32 %v834_v20, %v835_v48  ;;  %v861_v40 = vmax.f32 %v836_v46, %v837_v49  ;;  %v873_v61 = vpack.c.bf16 %v859_v52, %v859_v52  ;;  %v581_v37 = vrot.slane %v206_v54, %v2071_v18 }
 0x10e   :  { %v207_v57 = vmax.f32 %v181_v56, 0.0  ;;  %v2168_v62 = vadd.f32 %v2067_v15, %v188_v6  ;;  %v208_v5 = vmax.f32 %v186_v59, 0.0  ;;  %v588_v51 = vrot.slane %v574_v43, %v2071_v18 }
 0x10f   :  { %v874_v63 = vpack.c.bf16 %v860_v58, %v860_v58  ;;  %v881_v2 = vpack.c.bf16 %v861_v40, %v861_v40  ;;  %v979_v3 = vunpack.c.l.b16 %v873_v61  ;;  %v589_v1 = vcombine.high %v581_v37, %v581_v37 }
 0x110   :  { %v597_v30 = vrot.slane %v581_v37, %v2071_v18  ;;  %v623_v7 = vcombine.high %v207_v57, %v207_v57  ;;  %v630_v10 = vrot.slane %v207_v57, %v2071_v18  ;;  %v590_v11 = vcombine.high %v588_v51, %v588_v51 }
 0x111   :  { %v2172_v41 = vunpack.c.l.b16 %v874_v63  ;;  %v2174_v60 = vunpack.c.l.b16 %v881_v2  ;;  %v987_v9 = vrot.slane %v979_v3, 4  ;;  %v604_v15 = vrot.slane %v588_v51, %v2071_v18 }
 0x112   :  { %v611_v6 = vrot.slane %v589_v1, %v2071_v18  ;;  %v619_v16 = vcombine.high %v597_v30, %v597_v30  ;;  %v618_v25 = vrot.slane %v590_v11, %v2071_v18  ;;  %v637_v29 = vrot.slane %v623_v7, %v2071_v18 }
 0x113   :  { %v910_v17 = vrot.slane %v2172_v41, 4  ;;  %v913_v19 = vrot.slane %v2174_v60, 3  ;;  %v2182_v23 = vsel %vm911_vm6, %v987_v9, %v986_v4  ;;  %v989_v24 = vrot.slane %v2172_v41, 3 }
 0x114   :  { %v620_v28 = vcombine.high %v604_v15, %v604_v15  ;;  %v621_v8 = vcombine.high %v611_v6, %v611_v6  ;;  %v638_v32 = vcombine.high %v630_v10, %v630_v10  ;;  %v646_v33 = vrot.slane %v630_v10, %v2071_v18 }
 0x115   :  { %v672_v34 = vcombine.high %v208_v5, %v208_v5  ;;  %v679_v35 = vrot.slane %v208_v5, %v2071_v18  ;;  %v622_v21 = vcombine.high %v618_v25, %v618_v25  ;;  %v639_v36 = vcombine.high %v637_v29, %v637_v29 }
 0x116   :  { %v838_v27 = vmax.f32 %v573_v45, %v620_v28  ;;  %v653_v4 = vrot.slane %v637_v29, %v2071_v18  ;;  %v660_v38 = vrot.slane %v638_v32, %v2071_v18  ;;  %v668_v39 = vcombine.high %v646_v33, %v646_v33 }
 0x117   :  { %v840_v20 = vmax.f32 %v611_v6, %v646_v33  ;;  %v686_v42 = vrot.slane %v672_v34, %v2071_v18  ;;  %v839_v44 = vmax.f32 %v597_v30, %v622_v21  ;;  %v667_v46 = vrot.slane %v639_v36, %v2071_v18 }
 0x118   :  { %v669_v47 = vcombine.high %v653_v4, %v653_v4  ;;  %v687_v48 = vcombine.high %v679_v35, %v679_v35  ;;  %v670_v49 = vcombine.high %v660_v38, %v660_v38  ;;  %v841_v52 = vmax.f32 %v619_v16, %v660_v38 }
 0x119   :  { %v842_v54 = vmax.f32 %v621_v8, %v668_v39  ;;  %v688_v56 = vcombine.high %v686_v42, %v686_v42  ;;  %v862_v45 = vmax.f32 %v838_v27, %v839_v44  ;;  %v671_v58 = vcombine.high %v667_v46, %v667_v46 }
 0x11a   :  { %v695_v40 = vrot.slane %v679_v35, %v2071_v18  ;;  %v702_v61 = vrot.slane %v686_v42, %v2071_v18  ;;  %v843_v59 = vmax.f32 %v604_v15, %v670_v49  ;;  %v863_v43 = vmax.f32 %v840_v20, %v841_v52 }
 0x11b   :  { %v709_v37 = vrot.slane %v687_v48, %v2071_v18  ;;  %v716_v57 = vrot.slane %v688_v56, %v2071_v18  ;;  %v875_v63 = vpack.c.bf16 %v862_v45, %v862_v45  ;;  %v209_v11 = vmax.f32 %v2168_v62, 0.0 }
 0x11c   :  { %v717_v2 = vcombine.high %v695_v40, %v695_v40  ;;  %v718_v3 = vcombine.high %v702_v61, %v702_v61  ;;  %v844_v5 = vmax.f32 %v667_v46, %v702_v61  ;;  %v864_v51 = vmax.f32 %v842_v54, %v843_v59 }
 0x11d   :  { %v876_v1 = vpack.c.bf16 %v863_v43, %v863_v43  ;;  %v719_v30 = vcombine.high %v716_v57, %v716_v57  ;;  %v845_v7 = vmax.f32 %v669_v47, %v716_v57  ;;  %v980_v9 = vunpack.c.l.b16 %v875_v63  ;;  %v1938_v63 = vld [vmem:[%s2378_s2 + $0x10] sm:$0xff]  }
 0x11e   :  { %v846_v10 = vmax.f32 %v671_v58, %v718_v3  ;;  %v906_v15 = vsel %vm905_vm4, %v904_v26, %v2106_v50  ;;  %v882_v6 = vpack.c.bf16 %v864_v51, %v864_v51  ;;  %v726_v32 = vrot.slane %v209_v11, %v2071_v18  ;;  %v1939_v3 = vld [vmem:[%s2378_s2 + $0x18] sm:$0xff]  }
 0x11f   :  { %v899_v16 = vunpack.c.l.b16 %v876_v1  ;;  %v847_v25 = vmax.f32 %v695_v40, %v719_v30  ;;  %v865_v28 = vmax.f32 %v844_v5, %v845_v7  ;;  %v991_v8 = vrot.slane %v980_v9, 2  ;;  %v1940_v1 = vld [vmem:[%s2380_s3 + $0x10] sm:$0xff]   ;;  %v1941_v30 = vld [vmem:[%s2380_s3 + $0x18] sm:$0xff]  }
 0x120   :  { %v1065_v29 = vrot.slane %v980_v9, 4  ;;  %v909_v33 = vsel %vm908_vm5, %v907_v31, %v906_v15  ;;  %v900_v34 = vunpack.c.l.b16 %v882_v6  ;;  %v727_v26 = vcombine.high %v726_v32, %v726_v32 }
 0x121   :  { %v1067_v62 = vrot.slane %v899_v16, 3  ;;  %v1138_v35 = vrot.slane %v899_v16, 4  ;;  %v866_v21 = vmax.f32 %v846_v10, %v847_v25  ;;  %v1047_v13 = vpack.c.bf16 %v865_v28, %v865_v28 }
 0x122   :  { %v1066_v50 = vsel %vm911_vm6, %v1065_v29, %v2161_v55  ;;  %v734_v27 = vrot.slane %v726_v32, %v2071_v18  ;;  %v1140_v36 = vrot.slane %v900_v34, 3  ;;  %v912_v38 = vsel %vm911_vm6, %v910_v17, %v909_v33 }
 0x123   :  { %v1048_v4 = vpack.c.bf16 %v866_v21, %v866_v21  ;;  %v916_v22 = vrot.slane %v899_v16, 2  ;;  %v1057_v39 = vunpack.c.l.b16 %v1047_v13  ;;  %v741_v31 = vrot.slane %v727_v26, %v2071_v18 }
 0x124   :  { %v848_v20 = vmax.f32 %v709_v37, %v734_v27  ;;  %v915_v42 = vsel %vm914_vm7, %v913_v19, %v912_v38  ;;  %v919_v46 = vrot.slane %v900_v34, 1  ;;  %v990_v47 = vsel %vm914_vm7, %v989_v24, %v2182_v23  ;;  %v1937_v19 = vld [vmem:[%s2378_s2] sm:$0xff]  }
 0x125   :  { %v1058_v55 = vunpack.c.l.b16 %v1048_v4  ;;  %v918_v44 = vsel %vm917_vm8, %v916_v22, %v915_v42  ;;  %v1069_v48 = vrot.slane %v1057_v39, 2  ;;  %v849_v17 = vmax.f32 %v717_v2, %v741_v31 }
 0x126   :  { %v992_v49 = vsel %vm917_vm8, %v991_v8, %v990_v47  ;;  %v993_v52 = vrot.slane %v899_v16, 1  ;;  %v921_v60 = vsel %vm920_vm9, %v919_v46, %v918_v44  ;;  %v1068_v56 = vsel %vm914_vm7, %v1067_v62, %v1066_v50  ;;  %v1736_v50 = vld [vmem:[%s2379_s6 + $0x1] ss:$0 sm:$0xff] }
 0x127   :  { %v1071_v18 = vrot.slane %v1058_v55, 1  ;;  %v1142_v54 = vrot.slane %v1058_v55, 2  ;;  %v867_v45 = vmax.f32 %v848_v20, %v849_v17  ;;  %v922_v58 = vpack.c.b16 %v921_v60, %v921_v60 }
 0x128   :  { %v994_v41 = vsel %vm920_vm9, %v993_v52, %v992_v49  ;;  %v1070_v23 = vsel %vm917_vm8, %v1069_v48, %v1068_v56  ;;  %v1139_v40 = vsel %vm911_vm6, %v1138_v35, %v2158_v53  ;;  %v1970_v62 = vmov 1983009808   ;;  %v1942_v52 = vld [vmem:[%s2380_s3] sm:$0xff]  }
 0x129   :  { %v1072_v24 = vsel %vm920_vm9, %v1071_v18, %v1070_v23  ;;  %v1125_v61 = vpack.c.bf16 %v867_v45, %v867_v45  ;;  %1840 = vmatmul.mubr.msk.bf16.vlgmr.msra.gmra.mrb[0].mxu1 %vm929_vm10, %v922_v58  ;;  %v1141_v59 = vsel %vm914_vm7, %v1140_v36, %v1139_v40  ;;  %v995_v53 = vpack.c.b16 %v994_v41, %v994_v41  ;;  %v1944_v41 = vld [vmem:[%s2380_s3 + $0x20] sm:$0xff]  }
 0x12a   :  { %1844 = vmatpush3.bf16.msra.mxu1 %v1937_v19  ;;  %1845 = vmatprep.mubr.msk.bf16.mxu1 %vm1968_vm1, %v1967_v0  ;;  %v1143_v43 = vsel %vm917_vm8, %v1142_v54, %v1141_v59  ;;  %v1073_v5 = vpack.c.b16 %v1072_v24, %v1072_v24  ;;  %v1206_v35 = vunpack.c.l.s4 %v1970_v62  ;;  %v1943_v19 = vld [vmem:[%s2380_s3 + $0x8] sm:$0xff]  }
 0x12b   :  { %v1131_v37 = vunpack.c.l.b16 %v1125_v61  ;;  %1849 = vmatprep.subr.bf16.mxu1 %v1967_v0  ;;  %v1945_v61 = vld [vmem:[%s2380_s3 + $0x28] sm:$0xff]  }
 0x12c   :  { %v1207_v21 = vunpack.c.0.s8 %v1206_v35 }
 0x12d   :  { %v1144_v57 = vrot.slane %v1131_v37, 1 }
 0x12e   :  { %v1210_v38 = vsub.s32 %v1207_v21, %v2062_v14 }
 0x12f   :  { %v1145_v2 = vsel %vm920_vm9, %v1144_v57, %v1143_v43  ;;  %v1946_v43 = vld [vmem:[%s2380_s3 + $0x30] sm:$0xff]  }
 0x130   :  { %v1146_v51 = vpack.c.b16 %v1145_v2, %v1145_v2 }
 0x131   :  { %1846 = vmatmul.mubr.msk.bf16.vlgmr.msra.gmra.mrb[4].mxu1 %vm929_vm10, %v995_v53 }
 0x132   :  { %1850 = vmatpush3.bf16.msra.mxu1 %v1938_v63  ;;  %1851 = vmatprep.mubr.msk.bf16.mxu1 %vm1968_vm1, %v1967_v0  ;;  %v1947_v63 = vld [vmem:[%s2380_s3 + $0x38] sm:$0xff]  }
 0x133   :  { %1855 = vmatprep.subr.bf16.mxu1 %v1967_v0 }
 0x139   :  { %1852 = vmatmul.mubr.msk.bf16.vlgmr.msra.gmra.mrb[8].mxu1 %vm929_vm10, %v1073_v5  ;;  %v1949_v5 = vld [vmem:[%s2381_s4 + $0x8] sm:$0xff]  }
 0x13a   :  { %1856 = vmatpush3.bf16.msra.mxu1 %v1939_v3  ;;  %1857 = vmatprep.mubr.msk.bf16.mxu1 %vm1968_vm1, %v1967_v0  ;;  %v1948_v3 = vld [vmem:[%s2381_s4] sm:$0xff]  }
 0x13b   :  { %1861 = vmatprep.subr.bf16.mxu1 %v1967_v0 }
 0x141   :  { %1858 = vmatmul.mubr.msk.bf16.vlgmr.msra.gmra.mrb[12].mxu1 %vm929_vm10, %v1146_v51  ;;  %v1950_v51 = vld [vmem:[%s2381_s4 + $0x10] sm:$0xff]  }
 0x142   :  { %1865 = vmatprep.mubr.msk.bf16.mxu1 %vm1968_vm1, %v1967_v0  ;;  %1862 = vmatpush3.bf16.msra.mxu1 %v1940_v1  ;;  %v1951_v1 = vld [vmem:[%s2381_s4 + $0x18] sm:$0xff]  }
 0x143   :  { %1863 = vmatprep.subr.bf16.mxu1 %v1967_v0 }
 0x146   :  { %1864 = vmatpush3.bf16.msra.mxu1 %v1941_v30  ;;  %v1952_v30 = vld [vmem:[%s2382_s5] sm:$0xff]  }
 0x147   :  { %1869 = vmatprep.subr.bf16.mxu1 %v1967_v0  ;;  %1906 = vmatpush3.bf16.msra.mxu0 %v1952_v30 }
 0x148   :  { %1907 = vmatprep.subr.bf16.mxu0 %v1967_v0 }
 0x1fc   :  { %v967_v7 = vpop.f32.mrb[0].mxu1 }
 0x1fd   :  { %v1841_v9 = vpop.f32.mrb[1].mxu1 }
 0x1fe   :  { %v970_v10 = vpop.f32.mrb[2].mxu1  ;;  %v1954_v9 = vld [vmem:[%s2382_s5 + $0x10] sm:$0xff]  }
 0x1ff   :  { %v1842_v11 = vpop.f32.mrb[3].mxu1  ;;  %v1955_v10 = vld [vmem:[%s2382_s5 + $0x18] sm:$0xff]  }
 0x200   :  { %v1956_v11 = vld [vmem:[%s2382_s5 + $0x20] sm:$0xff]  }
 0x204   :  { %v1039_v15 = vpop.f32.mrb[4].mxu1 }
 0x205   :  { %v1040_v6 = vadd.f32 %v1039_v15, %v967_v7  ;;  %v1847_v16 = vpop.f32.mrb[5].mxu1  ;;  %v1953_v7 = vld [vmem:[%s2382_s5 + $0x8] sm:$0xff]  }
 0x206   :  { %v1042_v25 = vpop.f32.mrb[6].mxu1  ;;  %1908 = vmatpush3.bf16.msra.mxu0 %v1953_v7  ;;  %v1957_v15 = vld [vmem:[%s2382_s5 + $0x28] sm:$0xff]  }
 0x207   :  { %v1848_v28 = vpop.f32.mrb[7].mxu1  ;;  %1909 = vmatprep.subr.bf16.mxu0 %v1967_v0 }
 0x20a   :  { %1910 = vmatpush3.bf16.msra.mxu0 %v1954_v9 }
 0x20b   :  { %1911 = vmatprep.subr.bf16.mxu0 %v1967_v0 }
 0x20c   :  { %v1117_v8 = vpop.f32.mrb[8].mxu1 }
 0x20d   :  { %v1123_v29 = vadd.f32 %v1117_v8, %v1040_v6  ;;  %v1853_v32 = vpop.f32.mrb[9].mxu1 }
 0x20e   :  { %v1120_v33 = vpop.f32.mrb[10].mxu1  ;;  %1912 = vmatpush3.bf16.msra.mxu0 %v1955_v10 }
 0x20f   :  { %v1854_v34 = vpop.f32.mrb[11].mxu1  ;;  %1913 = vmatprep.subr.bf16.mxu0 %v1967_v0 }
 0x212   :  { %1914 = vmatpush3.bf16.msra.mxu0 %v1956_v11 }
 0x213   :  { %1915 = vmatprep.subr.bf16.mxu0 %v1967_v0 }
 0x214   :  { %v1190_v13 = vpop.f32.mrb[12].mxu1 }
 0x215   :  { %v1196_v26 = vadd.f32 %v1190_v13, %v1123_v29  ;;  %v1859_v27 = vpop.f32.mrb[13].mxu1 }
 0x216   :  { %v1193_v36 = vpop.f32.mrb[14].mxu1  ;;  %1916 = vmatpush3.bf16.msra.mxu0 %v1957_v15 }
 0x217   :  { %v1201_v4 = vadd.f32 %v1736_v50, %v1196_v26  ;;  %v1860_v22 = vpop.f32.mrb[15].mxu1  ;;  %1917 = vmatprep.subr.bf16.mxu0 %v1967_v0  ;;  %v1749_v26 = vld [vmem:[%s2379_s6 + $0x2] ss:$0 sm:$0xff] }
 0x219   :  { %v1202_v39 = vmax.f32 %v1201_v4, 0.0 }
 0x21b   :  { %v1204_v31 = vcombine.high %v1202_v39, %v1202_v39  ;;  %v1211_v20 = vrot.slane %v1202_v39, %v1210_v38 }
 0x21d   :  { %v1218_v42 = vrot.slane %v1204_v31, %v1210_v38  ;;  %v1226_v55 = vpack.c.bf16 %v1211_v20, %v1211_v20  ;;  %v1219_v60 = vcombine.high %v1211_v20, %v1211_v20 }
 0x21f   :  { %v1227_v44 = vpack.c.bf16 %v1218_v42, %v1218_v42  ;;  %v1238_v46 = vunpack.c.l.b16 %v1226_v55  ;;  %v1220_v47 = vcombine.high %v1218_v42, %v1218_v42  ;;  %v1357_v58 = vpack.c.bf16 %v1219_v60, %v1219_v60  ;;  %v1958_v42 = vld [vmem:[%s2382_s5 + $0x30] sm:$0xff]  }
 0x220   :  { %v1959_v55 = vld [vmem:[%s2377_s0 + $0x30] ss:$0 sps:$4 sm:$0x11]   ;;  %1918 = vmatpush3.bf16.msra.mxu0 %v1958_v42 }
 0x221   :  { %v1239_v48 = vunpack.c.l.b16 %v1227_v44  ;;  %v1240_v17 = vrot.slane %v1238_v46, 1  ;;  %v1358_v54 = vpack.c.bf16 %v1220_v47, %v1220_v47  ;;  %v1365_v40 = vunpack.c.l.b16 %v1357_v58  ;;  %v1960_v44 = vld [vmem:[%s2382_s5 + $0x38] sm:$0xff]   ;;  %1834 = vmatmul.mubr.msk.bf16.gmra.mrb[24].mxu0 %vm85_vm2, %v1959_v55  ;;  %1919 = vmatprep.subr.bf16.mxu0 %v1967_v0 }
 0x222   :  { %1921 = vmatprep.mubr.msk.bf16.mxu0 %vm1968_vm1, %v1967_v0 }
 0x223   :  { %v1241_v49 = vsel %vm902_vm3, %v1239_v48, %v1240_v17  ;;  %v1299_v14 = vrot.slane %v1239_v48, 7  ;;  %v1366_v45 = vunpack.c.l.b16 %v1358_v54  ;;  %v1430_v57 = vrot.slane %v1365_v40, 1 }
 0x224   :  { %v1242_v18 = vpack.c.b16 %v1241_v49, %v1241_v49  ;;  %1920 = vmatpush3.bf16.msra.mxu0 %v1960_v44 }
 0x225   :  { %v1300_v56 = vsel %vm902_vm3, %v1299_v14, %v1238_v46  ;;  %v1367_v24 = vrot.slane %v1366_v45, 7  ;;  %v1431_v53 = vsel %vm902_vm3, %v1366_v45, %v1430_v57  ;;  %v1750_v46 = vld [vmem:[%s2379_s6 + $0x3] ss:$0 sm:$0xff]  ;;  %v1756_v45 = vld [vmem:[%s2379_s6 + $0x4] ss:$0 sm:$0xff] }
 0x226   :  { %1866 = vmatmul.mubr.msk.bf16.vlgmr.msra.gmra.mrb[16].mxu1 %vm1255_vm11, %v1242_v18  ;;  %v1301_v23 = vpack.c.b16 %v1300_v56, %v1300_v56  ;;  %v1432_v2 = vpack.c.b16 %v1431_v53, %v1431_v53 }
 0x227   :  { %1870 = vmatpush3.bf16.msra.mxu1 %v1942_v52  ;;  %1873 = vmatprep.mubr.msk.bf16.mxu1 %vm1968_vm1, %v1967_v0  ;;  %v1368_v59 = vsel %vm902_vm3, %v1367_v24, %v1365_v40 }
 0x228   :  { %1871 = vmatprep.subr.bf16.mxu1 %v1967_v0  ;;  %v1369_v37 = vpack.c.b16 %v1368_v59, %v1368_v59 }
 0x22b   :  { %1872 = vmatpush3.bf16.msra.mxu1 %v1943_v19 }
 0x22c   :  { %1877 = vmatprep.subr.bf16.mxu1 %v1967_v0 }
 0x22e   :  { %1874 = vmatmul.mubr.msk.bf16.vlgmr.msra.gmra.mrb[20].mxu1 %vm1255_vm11, %v1301_v23 }
 0x22f   :  { %1878 = vmatpush3.bf16.msra.mxu1 %v1944_v41  ;;  %1881 = vmatprep.mubr.msk.bf16.mxu1 %vm1968_vm1, %v1967_v0 }
 0x230   :  { %1879 = vmatprep.subr.bf16.mxu1 %v1967_v0 }
 0x233   :  { %1880 = vmatpush3.bf16.msra.mxu1 %v1945_v61 }
 0x234   :  { %1885 = vmatprep.subr.bf16.mxu1 %v1967_v0 }
 0x236   :  { %1882 = vmatmul.mubr.msk.bf16.vlgmr.msra.gmra.mrb[24].mxu1 %vm1255_vm11, %v1369_v37 }
 0x237   :  { %1886 = vmatpush3.bf16.msra.mxu1 %v1946_v43  ;;  %1889 = vmatprep.mubr.msk.bf16.mxu1 %vm1968_vm1, %v1967_v0 }
 0x238   :  { %1887 = vmatprep.subr.bf16.mxu1 %v1967_v0 }
 0x23b   :  { %1888 = vmatpush3.bf16.msra.mxu1 %v1947_v63 }
 0x23c   :  { %1893 = vmatprep.subr.bf16.mxu1 %v1967_v0 }
 0x23e   :  { %1890 = vmatmul.mubr.msk.bf16.vlgmr.msra.gmra.mrb[28].mxu1 %vm1255_vm11, %v1432_v2 }
 0x23f   :  { %1901 = vmatprep.mubr.msk.bf16.mxu1 %vm1968_vm1, %v1967_v0  ;;  %1894 = vmatpush3.bf16.msra.mxu1 %v1948_v3 }
 0x240   :  { %1895 = vmatprep.subr.bf16.mxu1 %v1967_v0 }
 0x243   :  { %1896 = vmatpush3.bf16.msra.mxu1 %v1949_v5 }
 0x244   :  { %1897 = vmatprep.subr.bf16.mxu1 %v1967_v0 }
 0x247   :  { %1898 = vmatpush3.bf16.msra.mxu1 %v1950_v51 }
 0x248   :  { %1899 = vmatprep.subr.bf16.mxu1 %v1967_v0  ;;  %v1689_v0 = vand.u32 127, %v226_v12 }
 0x24a   :  { %vm1690_vm13 = vcmp.lt.s32.totalorder %v1689_v0, 4 }
 0x24b   :  { %1900 = vmatpush3.bf16.msra.mxu1 %v1951_v1 }
 0x2f4   :  { %v193_v54 = vpop.f32.mrb[24].mxu0 }
 0x2f5   :  { %v1835_v60 = vpop.f32.mrb[25].mxu0 }
 0x2f6   :  { %v195_v19 = vpop.f32.mrb[26].mxu0 }
 0x2f7   :  { %v1836_v56 = vpop.f32.mrb[27].mxu0 }
 0x2f9   :  { %v1293_v6 = vpop.f32.mrb[16].mxu1 }
 0x2fa   :  { %v1867_v16 = vpop.f32.mrb[17].mxu1 }
 0x2fb   :  { %v1296_v25 = vpop.f32.mrb[18].mxu1 }
 0x2fc   :  { %v1868_v28 = vpop.f32.mrb[19].mxu1 }
 0x301   :  { %v1351_v8 = vpop.f32.mrb[20].mxu1 }
 0x302   :  { %v1352_v29 = vadd.f32 %v1351_v8, %v1293_v6  ;;  %v1875_v32 = vpop.f32.mrb[21].mxu1 }
 0x303   :  { %v1354_v33 = vpop.f32.mrb[22].mxu1 }
 0x304   :  { %v1876_v34 = vpop.f32.mrb[23].mxu1 }
 0x309   :  { %v1419_v62 = vpop.f32.mrb[24].mxu1 }
 0x30a   :  { %v1425_v35 = vadd.f32 %v1419_v62, %v1352_v29  ;;  %v1883_v21 = vpop.f32.mrb[25].mxu1 }
 0x30b   :  { %v1422_v50 = vpop.f32.mrb[26].mxu1 }
 0x30c   :  { %v1884_v13 = vpop.f32.mrb[27].mxu1 }
 0x311   :  { %v1482_v27 = vpop.f32.mrb[28].mxu1 }
 0x312   :  { %v1488_v36 = vadd.f32 %v1482_v27, %v1425_v35  ;;  %v1891_v4 = vpop.f32.mrb[29].mxu1 }
 0x313   :  { %v1485_v38 = vpop.f32.mrb[30].mxu1 }
 0x314   :  { %v1493_v22 = vadd.f32 %v1749_v26, %v1488_v36  ;;  %v1892_v39 = vpop.f32.mrb[31].mxu1 }
 0x316   :  { %v1494_v31 = vmax.f32 %v1493_v22, 0.0 }
 0x318   :  { %v1495_v20 = vpack.c.bf16 %v1494_v31, %v1494_v31 }
 0x31a   :  { %1902 = vmatmul.mubr.msk.bf16.vlgmr.msra.gmra.mrb[32].mxu1 %vm1533_vm12, %v1495_v20 }
 0x3ed   :  { %v1571_v47 = vpop.f32.mrb[32].mxu1 }
 0x3ee   :  { %v1572_v48 = vadd.f32 %v1750_v46, %v1571_v47  ;;  %v1903_v17 = vpop.f32.mrb[33].mxu1 }
 0x3ef   :  { %v1574_v49 = vpop.f32.mrb[34].mxu1 }
 0x3f0   :  { %1961 = vtanh.f32 %v1572_v48  ;;  %v1904_v52 = vpop.f32.mrb[35].mxu1 }
 0x3fa   :  { %v1962_v18 = vpop.eup %1961 }
 0x3fb   :  { %v1578_v14 = vpack.c.bf16 %v1962_v18, %v1962_v18 }
 0x3fd   :  { %1922 = vmatmul.mubr.bf16.vlgmr.msra.gmra.mrb[28].mxu0 %v1578_v14 }
 0x4d0   :  { %v1682_v58 = vpop.f32.mrb[28].mxu0 }
 0x4d1   :  { %v1683_v41 = vadd.f32 %v1756_v45, %v1682_v58  ;;  %v1923_v23 = vpop.f32.mrb[29].mxu0 }
 0x4d2   :  { %v1685_v24 = vpop.f32.mrb[30].mxu0 }
 0x4d3   :  { %v1924_v40 = vpop.f32.mrb[31].mxu0  ;;  %v1691_v61 = vsel %vm1690_vm13, %v1683_v41, -inf }
 0x4d4   :  { %v1693_v59 = vsel %vm1692_vm14, %v1691_v61, -inf }
 0x4d5   :  { %1694 = vmax.xlane.f32.xlu0 %v1693_v59 }
 0x562   :  { %v1695_v43 = vpop.xlane.xlu0 %1694 }
 0x563   :  { %v1696_v37 = vsub.f32 %v1683_v41, %v1695_v43 }
 0x565   :  { %v1697_v57 = vmul.f32 1.442695, %v1696_v37 }
 0x567   :  { %1963 = vpow2.f32 %v1697_v57 }
 0x571   :  { %v1964_v12 = vpop.eup %1963 }
 0x572   :  { %v1699_v63 = vsel %vm1690_vm13, %v1964_v12, 0.0 }
 0x573   :  { %v1700_v53 = vsel %vm1692_vm14, %v1699_v63, 0.0 }
 0x574   :  { %1701 = vadd.xlane.f32.xlu0 %v1700_v53 }
 0x601   :  { %v1702_v2 = vpop.xlane.xlu0 %1701 }
 0x602   :  { %1965 = vlog2.f32 %v1702_v2 }
 0x60c   :  { %v1966_v3 = vpop.eup %1965 }
 0x60d   :  { %v1704_v5 = vmul.f32 0.6931472, %v1966_v3 }
 0x60f   :  { %v1705_v51 = vsub.f32 %v1696_v37, %v1704_v5 }
 0x611   :  { %v1706_v1 = vsel %vm1690_vm13, %v1705_v51, %v1683_v41 }
 0x612   :  { %1707 = vst [vmem:[%s2383_s7] sm:$0x3] %v1706_v1 }

</bundles_post_ra>
